<compile_context>
chip_gen: v7x
topology: tpu7x:2x2x1
jax: 0.10.0
libtpu: 0.0.40
codegen_flags: <defaults>
</compile_context>

<pallas_src>
import jax
import jax.numpy as jnp
from jax.experimental import pallas as pl
from jax.experimental.pallas import tpu as pltpu


def _make_kernel(tr, L, rpl, tiles_per_part, m_rows):
    """tr: lane-rows per tile, L: lanes per lane-row, rpl: orig rows per lane-row."""

    def kernel(prob_ref, fm_ref, rew_ref, out_ref, acc_ref):
        p = pl.program_id(0)
        i = pl.program_id(1)

        @pl.when(i == 0)
        def _init():
            acc_ref[...] = jnp.zeros_like(acc_ref)

        prob = prob_ref[...].astype(jnp.float32)      # (tr, L) upcast in-kernel
        fm = fm_ref[...]                              # (tr, rpl) int32 matching lane
        rew = rew_ref[...]                            # (tr, rpl) f32 reward

        # Per-lane weight: reward of the sub-row whose target lane this is.
        # The rpl lane groups are disjoint, so plain replacement is exact.
        col = jax.lax.broadcasted_iota(jnp.int32, (tr, L), 1)
        w = jnp.zeros((tr, L), jnp.float32)
        for j in range(rpl):                          # rpl is small & static
            w = jnp.where(col == fm[:, j:j + 1], rew[:, j:j + 1], w)

        # Mask lane-rows past the end of the (un-padded) input: the tail of the
        # last tile may hold stale VMEM data which must not reach the sum.
        start = (p * tiles_per_part + i) * tr
        nvalid = m_rows - start
        row = jax.lax.broadcasted_iota(jnp.int32, (tr, 1), 0)
        contrib = jnp.where(row < nvalid, prob * w, 0.0)     # (tr, L)

        # vreg-shaped accumulate: fold sublane groups with VPU adds only
        # (leading-dim reshape is layout-trivial; no XLU work per step).
        acc_ref[...] += contrib.reshape(tr // 8, 8, L).sum(axis=0)

        @pl.when(i == pl.num_programs(1) - 1)
        def _finalize():
            # Single cross-lane/cross-sublane reduction, once per partial,
            # stored into a lane-dense (8,128) output block.
            out_ref[...] = jnp.broadcast_to(-jnp.sum(acc_ref[...]), out_ref.shape)

    return kernel


def gan_loss(prob, target, reward, *, tile_rows=None):
    """loss = -sum_i prob[i, target[i]] * reward[i]  (scalar f32)."""
    n, c = prob.shape
    isz = jnp.dtype(prob.dtype).itemsize

    target = target.astype(jnp.int32).reshape(n)
    reward = reward.astype(jnp.float32).reshape(n)

    # Lane-dense packing factor: rpl consecutive rows per 128-lane lane-row.
    rpl = 128 // c if (c <= 128 and 128 % c == 0) else 1
    if rpl > 16 or n % rpl != 0:          # tiny C or ragged N: plain layout
        rpl = 1
    L = rpl * c                            # lanes per packed lane-row
    m = n // rpl                           # number of lane-rows
    prob2 = prob.reshape(m, L)             # row-major; identity when rpl == 1

    # Matching lane inside the packed lane-row; invalid targets -> L (never
    # matches any lane), i.e. they contribute 0, as do masked tail rows.
    sub_row = (jnp.arange(n, dtype=jnp.int32) % rpl) * c
    valid_t = (target >= 0) & (target < c)
    fm = jnp.where(valid_t, sub_row + target, L).reshape(m, rpl)
    rew2 = reward.reshape(m, rpl)

    # Row-tile size from a lane-padded VMEM budget; per-dtype sublane multiple.
    sub = {2: 16, 1: 32}.get(isz, 8)
    lpad = 128 * pl.cdiv(L, 128)
    if tile_rows is None:
        budget = 2 * 1024 * 1024                       # per prob buffer
        tr = budget // (lpad * isz)
    else:
        tr = max(1, tile_rows // rpl)                  # tile_rows = original rows
    tr = max(sub, (tr // sub) * sub)
    tr = min(tr, sub * pl.cdiv(m, sub))

    n_tiles = pl.cdiv(m, tr)
    # Leading 'parallel' axis so multi-core parts can shard the row range;
    # only used when it splits evenly (no fully out-of-bounds tiles).
    num_partials = 2 if (n_tiles >= 2 and n_tiles % 2 == 0) else 1
    tiles_per_part = n_tiles // num_partials

    # TODO(synk): for vocab-scale C, add a C-tiling grid axis (or a manual
    # per-row 128-lane chunk gather via pl.ANY + make_async_copy) instead of
    # streaming full-C blocks.
    # TODO(synk): on multi-TensorCore parts (v7x) pltpu.CORE_PARALLEL on the
    # leading axis would shard it across cores; plain "parallel" is kept here
    # for portability across v5e/v6e.

    row_map = lambda p, i: (p * tiles_per_part + i, 0)

    # Explicit VMEM ceiling: double-buffered prob + fm + rew + out + acc.
    vmem_need = (2 * tr * lpad * isz            # prob (2 buffers)
                 + 2 * 2 * tr * 128 * 4         # fm + rew (lane-padded in VMEM)
                 + 2 * 8 * 128 * 4              # out block
                 + 8 * lpad * 4)                # accumulator scratch
    vmem_limit = int(min(max(vmem_need + (4 << 20), 16 << 20), 64 << 20))

    out = pl.pallas_call(
        _make_kernel(tr, L, rpl, tiles_per_part, m),
        out_shape=jax.ShapeDtypeStruct((num_partials, 8, 128), jnp.float32),
        grid_spec=pltpu.PrefetchScalarGridSpec(
            num_scalar_prefetch=0,
            grid=(num_partials, tiles_per_part),
            in_specs=[
                pl.BlockSpec((tr, L), row_map),
                pl.BlockSpec((tr, rpl), row_map),
                pl.BlockSpec((tr, rpl), row_map),
            ],
            out_specs=pl.BlockSpec((1, 8, 128), lambda p, i: (p, 0, 0)),
            scratch_shapes=[pltpu.VMEM((8, L), jnp.float32)],
        ),
        compiler_params=pltpu.CompilerParams(
            dimension_semantics=("parallel", "arbitrary"),
            vmem_limit_bytes=vmem_limit,
        ),
        cost_estimate=pl.CostEstimate(
            flops=(2 * rpl + 3) * m * lpad,
            transcendentals=0,
            # Count lane-padded HBM layouts: prob + fm + rew + out.
            bytes_accessed=m * lpad * isz + 2 * m * 128 * 4
            + num_partials * 8 * 128 * 4,
        ),
    )(prob2, fm, rew2)

    return jnp.sum(out[:, 0, 0])


def _reference(prob, target, reward):
    picked = prob[jnp.arange(prob.shape[0]), target]
    return -jnp.sum(picked.astype(jnp.float32) * reward.astype(jnp.float32))


if __name__ == "__main__":
    key = jax.random.PRNGKey(0)
    k1, k2, k3, k4, k5, k6, k7, k8, k9 = jax.random.split(key, 9)

    # 1) Small shapes consistent with the module (packed path: C=32 -> rpl=4).
    N, C = 8, 32
    prob = jax.nn.softmax(jax.random.normal(k1, (N, C), dtype=jnp.float32), axis=-1)
    target = jax.random.randint(k2, (N,), 0, C, dtype=jnp.int32)
    reward = jax.random.uniform(k3, (N,), dtype=jnp.float32)
    loss = gan_loss(prob, target, reward)
    jax.block_until_ready(loss)
    ref = _reference(prob, target, reward)
    assert jnp.allclose(loss, ref, atol=1e-5, rtol=1e-5), (loss, ref)

    # 2) Multi-tile + 2-partial split + masked tail rows (no padding copies).
    N2, C2 = 300, 32
    prob2 = jax.nn.softmax(jax.random.normal(k4, (N2, C2), dtype=jnp.float32), axis=-1)
    target2 = jax.random.randint(k5, (N2,), 0, C2, dtype=jnp.int32)
    reward2 = jax.random.uniform(k6, (N2,), dtype=jnp.float32)
    loss2 = gan_loss(prob2, target2, reward2, tile_rows=160)
    jax.block_until_ready(loss2)
    ref2 = _reference(prob2, target2, reward2)
    assert jnp.allclose(loss2, ref2, atol=1e-4, rtol=1e-4), (loss2, ref2)

    # 3) Generic (un-packed) path: C does not divide 128.
    N3, C3 = 48, 20
    prob3 = jax.nn.softmax(jax.random.normal(k7, (N3, C3), dtype=jnp.float32), axis=-1)
    target3 = jax.random.randint(k8, (N3,), 0, C3, dtype=jnp.int32)
    reward3 = jax.random.uniform(k9, (N3,), dtype=jnp.float32)
    loss3 = gan_loss(prob3, target3, reward3)
    jax.block_until_ready(loss3)
    ref3 = _reference(prob3, target3, reward3)
    assert jnp.allclose(loss3, ref3, atol=1e-5, rtol=1e-5), (loss3, ref3)

    print("KERNEL_OK")
</pallas_src>

<mosaic_0001>
module attributes {stable_mosaic.version = 11 : i64} {
  func.func @kernel(%arg0: i32, %arg1: i32, %arg2: memref<8x128xf32, #tpu.memory_space<vmem>>, %arg3: memref<8x4xi32, #tpu.memory_space<vmem>>, %arg4: memref<8x4xf32, #tpu.memory_space<vmem>>, %arg5: memref<1x8x128xf32, #tpu.memory_space<vmem>>, %arg6: memref<8x128xf32, #tpu.memory_space<vmem>>) attributes {dimension_semantics = [#tpu.dimension_semantics<parallel>, #tpu.dimension_semantics<arbitrary>], iteration_bounds = array<i64: 1, 1>, scalar_prefetch = 0 : i64, scratch_operands = 1 : i64, tpu.core_type = #tpu.core_type<tc>, window_params = [{transform_indices = @transform_0, window_bounds = array<i64: 8, 128>}, {transform_indices = @transform_1, window_bounds = array<i64: 8, 4>}, {transform_indices = @transform_2, window_bounds = array<i64: 8, 4>}, {transform_indices = @transform_3, window_bounds = array<i64: 1, 8, 128>}]} {
    %c0_i32 = arith.constant 0 : i32
    %0 = arith.cmpi eq, %arg1, %c0_i32 : i32
    %1 = arith.extui %0 : i1 to i32
    %c0_i32_0 = arith.constant 0 : i32
    %2 = arith.cmpi ne, %1, %c0_i32_0 : i32
    scf.if %2 {
      %cst_14 = arith.constant 0.000000e+00 : f32
      %56 = vector.broadcast %cst_14 : f32 to vector<8x128xf32>
      %c0_15 = arith.constant 0 : index
      %c0_16 = arith.constant 0 : index
      %57 = vector.load %arg6[%c0_15, %c0_16] : memref<8x128xf32, #tpu.memory_space<vmem>>, vector<8x128xf32>
      tpu.vector_store %arg6[%c0_15, %c0_16], %56 {strides = array<i32>} : memref<8x128xf32, #tpu.memory_space<vmem>>, vector<8x128xf32>,
    } else {
    }
    %c0 = arith.constant 0 : index
    %c0_1 = arith.constant 0 : index
    %3 = vector.load %arg2[%c0, %c0_1] : memref<8x128xf32, #tpu.memory_space<vmem>>, vector<8x128xf32>
    %c0_2 = arith.constant 0 : index
    %c0_3 = arith.constant 0 : index
    %4 = vector.load %arg3[%c0_2, %c0_3] : memref<8x4xi32, #tpu.memory_space<vmem>>, vector<8x4xi32>
    %c0_4 = arith.constant 0 : index
    %c0_5 = arith.constant 0 : index
    %5 = vector.load %arg4[%c0_4, %c0_5] : memref<8x4xf32, #tpu.memory_space<vmem>>, vector<8x4xf32>
    %6 = tpu.iota {dimensions = array<i32: 1>} : vector<8x128xi32>
    %cst = arith.constant 0.000000e+00 : f32
    %7 = vector.broadcast %cst : f32 to vector<8x128xf32>
    %8 = vector.extract_strided_slice %4 {offsets = [0, 0], sizes = [8, 1], strides = [1, 1]} : vector<8x4xi32> to vector<8x1xi32>
    %9 = vector.broadcast %8 : vector<8x1xi32> to vector<8x128xi32>
    %10 = arith.cmpi eq, %6, %9 : vector<8x128xi32>
    %11 = vector.extract_strided_slice %5 {offsets = [0, 0], sizes = [8, 1], strides = [1, 1]} : vector<8x4xf32> to vector<8x1xf32>
    %12 = vector.shape_cast %11 : vector<8x1xf32> to vector<8x1xf32>
    %13 = vector.broadcast %12 : vector<8x1xf32> to vector<8x128xf32>
    %14 = arith.select %10, %13, %7 : vector<8x128xi1>, vector<8x128xf32>
    %15 = vector.extract_strided_slice %4 {offsets = [0, 1], sizes = [8, 1], strides = [1, 1]} : vector<8x4xi32> to vector<8x1xi32>
    %16 = vector.broadcast %15 : vector<8x1xi32> to vector<8x128xi32>
    %17 = arith.cmpi eq, %6, %16 : vector<8x128xi32>
    %18 = vector.extract_strided_slice %5 {offsets = [0, 1], sizes = [8, 1], strides = [1, 1]} : vector<8x4xf32> to vector<8x1xf32>
    %19 = vector.shape_cast %18 : vector<8x1xf32> to vector<8x1xf32>
    %20 = vector.broadcast %19 : vector<8x1xf32> to vector<8x128xf32>
    %21 = arith.select %17, %20, %14 : vector<8x128xi1>, vector<8x128xf32>
    %22 = vector.extract_strided_slice %4 {offsets = [0, 2], sizes = [8, 1], strides = [1, 1]} : vector<8x4xi32> to vector<8x1xi32>
    %23 = vector.broadcast %22 : vector<8x1xi32> to vector<8x128xi32>
    %24 = arith.cmpi eq, %6, %23 : vector<8x128xi32>
    %25 = vector.extract_strided_slice %5 {offsets = [0, 2], sizes = [8, 1], strides = [1, 1]} : vector<8x4xf32> to vector<8x1xf32>
    %26 = vector.shape_cast %25 : vector<8x1xf32> to vector<8x1xf32>
    %27 = vector.broadcast %26 : vector<8x1xf32> to vector<8x128xf32>
    %28 = arith.select %24, %27, %21 : vector<8x128xi1>, vector<8x128xf32>
    %29 = vector.extract_strided_slice %4 {offsets = [0, 3], sizes = [8, 1], strides = [1, 1]} : vector<8x4xi32> to vector<8x1xi32>
    %30 = vector.broadcast %29 : vector<8x1xi32> to vector<8x128xi32>
    %31 = arith.cmpi eq, %6, %30 : vector<8x128xi32>
    %32 = vector.extract_strided_slice %5 {offsets = [0, 3], sizes = [8, 1], strides = [1, 1]} : vector<8x4xf32> to vector<8x1xf32>
    %33 = vector.shape_cast %32 : vector<8x1xf32> to vector<8x1xf32>
    %34 = vector.broadcast %33 : vector<8x1xf32> to vector<8x128xf32>
    %35 = arith.select %31, %34, %28 : vector<8x128xi1>, vector<8x128xf32>
    %c1_i32 = arith.constant 1 : i32
    %36 = arith.muli %arg0, %c1_i32 : i32
    %37 = arith.addi %36, %arg1 : i32
    %c8_i32 = arith.constant 8 : i32
    %38 = arith.muli %37, %c8_i32 : i32
    %c2_i32 = arith.constant 2 : i32
    %39 = arith.subi %c2_i32, %38 : i32
    %40 = tpu.iota {dimensions = array<i32: 0>} : vector<8x1xi32>
    %41 = vector.broadcast %39 : i32 to vector<8x1xi32>
    %42 = arith.cmpi slt, %40, %41 : vector<8x1xi32>
    %43 = arith.mulf %3, %35 : vector<8x128xf32>
    %cst_6 = arith.constant 0.000000e+00 : f32
    %44 = vector.shape_cast %42 : vector<8x1xi1> to vector<8x1xi1>
    %45 = vector.broadcast %44 : vector<8x1xi1> to vector<8x128xi1>
    %46 = vector.broadcast %cst_6 : f32 to vector<8x128xf32>
    %47 = arith.select %45, %43, %46 : vector<8x128xi1>, vector<8x128xf32>
    %c0_7 = arith.constant 0 : index
    %c0_8 = arith.constant 0 : index
    %48 = vector.load %arg6[%c0_7, %c0_8] : memref<8x128xf32, #tpu.memory_space<vmem>>, vector<8x128xf32>
    %49 = vector.shape_cast %47 : vector<8x128xf32> to vector<1x8x128xf32>
    %cst_9 = arith.constant dense<0.000000e+00> : vector<8x128xf32>
    %50 = vector.multi_reduction <add>, %49, %cst_9 [0] : vector<1x8x128xf32> to vector<8x128xf32>
    %51 = arith.addf %48, %50 : vector<8x128xf32>
    %c0_10 = arith.constant 0 : index
    %c0_11 = arith.constant 0 : index
    %52 = vector.load %arg6[%c0_10, %c0_11] : memref<8x128xf32, #tpu.memory_space<vmem>>, vector<8x128xf32>
    tpu.vector_store %arg6[%c0_10, %c0_11], %51 {strides = array<i32>} : memref<8x128xf32, #tpu.memory_space<vmem>>, vector<8x128xf32>,
    %c0_i32_12 = arith.constant 0 : i32
    %53 = arith.cmpi eq, %arg1, %c0_i32_12 : i32
    %54 = arith.extui %53 : i1 to i32
    %c0_i32_13 = arith.constant 0 : i32
    %55 = arith.cmpi ne, %54, %c0_i32_13 : i32
    scf.if %55 {
      %c0_14 = arith.constant 0 : index
      %c0_15 = arith.constant 0 : index
      %56 = vector.load %arg6[%c0_14, %c0_15] : memref<8x128xf32, #tpu.memory_space<vmem>>, vector<8x128xf32>
      %57 = vector.shape_cast %56 : vector<8x128xf32> to vector<1x8x128xf32>
      %cst_16 = arith.constant dense<0.000000e+00> : vector<1xf32>
      %58 = vector.multi_reduction <add>, %57, %cst_16 [1, 2] : vector<1x8x128xf32> to vector<1xf32>
      %59 = vector.shape_cast %58 : vector<1xf32> to vector<1x1x1xf32>
      %60 = vector.extract %59[0, 0, 0] : f32 from vector<1x1x1xf32>
      %cst_17 = arith.constant 0.000000e+00 : f32
      %61 = arith.subf %cst_17, %60 : f32
      %62 = vector.broadcast %61 : f32 to vector<1x8x128xf32>
      %c0_18 = arith.constant 0 : index
      %c0_19 = arith.constant 0 : index
      %c0_20 = arith.constant 0 : index
      %63 = vector.load %arg5[%c0_18, %c0_19, %c0_20] : memref<1x8x128xf32, #tpu.memory_space<vmem>>, vector<1x8x128xf32>
      tpu.vector_store %arg5[%c0_18, %c0_19, %c0_20], %62 {strides = array<i32>} : memref<1x8x128xf32, #tpu.memory_space<vmem>>, vector<1x8x128xf32>,
    } else {
    }
    return
  }
  func.func @transform_0(%arg0: i32, %arg1: i32) -> (i32, i32) {
    %c1_i32 = arith.constant 1 : i32
    %0 = arith.muli %arg0, %c1_i32 : i32
    %1 = arith.addi %0, %arg1 : i32
    %c0_i32 = arith.constant 0 : i32
    %c0_i32_0 = arith.constant 0 : i32
    return %1, %c0_i32 : i32, i32
  }
  func.func @transform_1(%arg0: i32, %arg1: i32) -> (i32, i32) {
    %c1_i32 = arith.constant 1 : i32
    %0 = arith.muli %arg0, %c1_i32 : i32
    %1 = arith.addi %0, %arg1 : i32
    %c0_i32 = arith.constant 0 : i32
    %c0_i32_0 = arith.constant 0 : i32
    return %1, %c0_i32 : i32, i32
  }
  func.func @transform_2(%arg0: i32, %arg1: i32) -> (i32, i32) {
    %c1_i32 = arith.constant 1 : i32
    %0 = arith.muli %arg0, %c1_i32 : i32
    %1 = arith.addi %0, %arg1 : i32
    %c0_i32 = arith.constant 0 : i32
    %c0_i32_0 = arith.constant 0 : i32
    return %1, %c0_i32 : i32, i32
  }
  func.func @transform_3(%arg0: i32, %arg1: i32) -> (i32, i32, i32) {
    %c0_i32 = arith.constant 0 : i32
    %c0_i32_0 = arith.constant 0 : i32
    %c0_i32_1 = arith.constant 0 : i32
    return %arg0, %c0_i32, %c0_i32_0 : i32, i32, i32
  }
}

</mosaic_0001>

<bundles_post_ra>
// kernel: tpu_custom_call.1
= control target key start
LH: loop header
LB: loop body
LE: loop exit
PB: predicated region body
PF: predicated region fallthrough
CT: control target
= control target key end

     0   :  { %8 = vsyncpa [#allocation4], 0  ;;  %s332_s0 = inlined_call_operand.hbm [shape: f32[2,128], index: 0, kind: input, shape index: {}]   ;;  %s333_s1 = inlined_call_operand.vmem [shape: s32[2,4], index: 1, kind: input, shape index: {}]   ;;  %s334_s2 = inlined_call_operand.vmem [shape: f32[2,4], index: 2, kind: input, shape index: {}]   ;;  %s335_s3 = inlined_call_operand.hbm [shape: f32[1,8,128], index: 3, kind: output, shape index: {}]  }
   0x1   :  { %9 = vsyncpa [#allocation5], 0 }
   0x2   :  { %18 = vsyncadd [#allocation4], 96  ;;  %s274_s12 = smov [#allocation3]   ;;  %s226_s16 = scalar_lea.hbm %s332_s0, 32 }
   0x3   :  { %s23_s13 = sshll.u32 %s274_s12, 4  ;;  %p227_p0 = scmp.ne.s32.totalorder %s332_s0, %s226_s16  ;;  %s24_s13 = int_to_ptr.vmem [resolvable:$true] %s23_s13 }
   0x4   :  { %p230_p1 = scmp.lt.u32.totalorder %s226_s16, %s332_s0 }
   0x6   :  { %p232_p2 = pnand %p230_p1, %p227_p0 }
   0x8   :  { %235 = shalt.err (!%p232_p2)
}
   0x9   :  { %s236_s21 = scalar_lea.vmem %s24_s13, 32  ;;  %s240_s22 = scalar_lea.vmem %s24_s13, 128 }
   0xa   :  { %p237_p3 = scmp.ne.s32.totalorder %s24_s13, %s236_s21  ;;  %p241_p4 = scmp.lt.s32.totalorder %s24_s13, %s24_s13 }
   0xb   :  { %p242_p5 = scmp.lt.s32.totalorder %s240_s22, %s236_s21 }
   0xd   :  { %p243_p6 = por %p242_p5, %p241_p4 }
   0xf   :  { %p244_p7 = pnand %p243_p6, %p237_p3 }
  0x11   :  { %247 = shalt.err (!%p244_p7)
}
  0x12   :  { %s275_s23 = smov 32   ;;  %s276_s24 = smov 2  }
  0x13   :  { %29 = dma.hbm_to_vmem [thread:$0]  %s332_s0, 32, %s24_s13, [#allocation4], %s275_s23, %s275_s23, %s276_s24  }
  0x14   :  { %270 = dma.done.wait [#allocation4], 128  }
  0x15   :  { %271 = vsyncadd [#allocation4], 4294967168  ;;  %v277_v0 = vmov 1   ;;  %v278_v1 = vmov 0   ;;  %v111_v2 = vld [vmem:[%s333_s1] sm:$0xff]  ;;  %v279_v4 = vmov 2   ;;  %v113_v8 = vlaneseq }
  0x16   :  { %221 = vset.pattern.permute.xlu1 %v277_v0  ;;  %220 = vset.pattern.permute.xlu0 %v278_v1  ;;  %v112_v3 = vld [vmem:[%s334_s2] sm:$0xff]  ;;  %v280_v5 = vmov 3   ;;  %s281_s0 = smov [#allocation6]  }
  0x17   :  { %126 = vperm.xlu1 %221, %v111_v2   ;;  %116 = vperm.xlu0 %220, %v111_v2   ;;  %v114_v11 = vand.u32 127, %v113_v8  ;;  %v156_v15 = vshrl.u32 %v113_v8, 7  ;;  %v110_v19 = vld [vmem:[#allocation3] sm:$0xff]  ;;  %s189_s1 = sshll.u32 %s281_s0, 4  ;;  %s190_s1 = int_to_ptr.vmem [resolvable:$true] %s189_s1 }
  0x18   :  { %s248_s5 = scalar_lea.vmem %s190_s1, 128  ;;  %p253_p9 = scmp.lt.s32.totalorder %s190_s1, %s190_s1 }
  0x19   :  { %vm158_vm4 = vcmp.lt.s32.totalorder %v156_v15, 2  ;;  %p249_p8 = scmp.ne.s32.totalorder %s190_s1, %s248_s5  ;;  %p254_p10 = scmp.lt.s32.totalorder %s248_s5, %s248_s5 }
  0x1b   :  { %130 = vperm.xlu1 %221, %v112_v3   ;;  %121 = vperm.xlu0 %220, %v112_v3   ;;  %p255_p11 = por %p254_p10, %p253_p9 }
  0x1d   :  { %p256_p12 = pnand %p255_p11, %p249_p8 }
  0x1f   :  { %223 = vset.pattern.permute.xlu1 %v279_v4  ;;  %222 = vset.pattern.permute.xlu0 %v279_v4 }
  0x20   :  { %139 = vperm.xlu1 %223, %v112_v3   ;;  %135 = vperm.xlu0 %222, %v111_v2  }
  0x24   :  { %224 = vset.pattern.permute.xlu1 %v280_v5  ;;  %225 = vset.pattern.permute.xlu0 %v280_v5 }
  0x25   :  { %144 = vperm.xlu1 %224, %v111_v2   ;;  %148 = vperm.xlu0 %225, %v112_v3  }
  0x96   :  { %v127_v6 = vpop.permute.xlu1 %126  ;;  %v117_v7 = vpop.permute.xlu0 %116 }
  0x97   :  { %vm118_vm0 = vcmp.eq.s32.totalorder %v114_v11, %v117_v7  ;;  %vm128_vm2 = vcmp.eq.s32.totalorder %v114_v11, %v127_v6 }
  0x9a   :  { %v131_v9 = vpop.permute.xlu1 %130  ;;  %v122_v10 = vpop.permute.xlu0 %121 }
  0x9b   :  { %v124_v14 = vsel %vm118_vm0, %v122_v10, 0.0 }
  0x9c   :  { %v133_v16 = vsel %vm128_vm2, %v131_v9, %v124_v14 }
  0x9f   :  { %v140_v12 = vpop.permute.xlu1 %139  ;;  %v136_v13 = vpop.permute.xlu0 %135 }
  0xa0   :  { %vm137_vm1 = vcmp.eq.s32.totalorder %v114_v11, %v136_v13 }
  0xa1   :  { %v142_v20 = vsel %vm137_vm1, %v140_v12, %v133_v16 }
  0xa4   :  { %v145_v17 = vpop.permute.xlu1 %144  ;;  %v149_v18 = vpop.permute.xlu0 %148 }
  0xa5   :  { %vm146_vm3 = vcmp.eq.s32.totalorder %v114_v11, %v145_v17 }
  0xa6   :  { %v151_v21 = vsel %vm146_vm3, %v149_v18, %v142_v20 }
  0xa7   :  { %v159_v22 = vmul.f32 %v151_v21, %v110_v19 }
  0xa9   :  { %v162_v23 = vsel %vm158_vm4, %v159_v22, 0.0 }
  0xaa   :  { %171 = vadd.xlane.f32.xlu1 %v162_v23 }
 0x137   :  { %v172_v24 = vpop.xlane.xlu1 %171 }
 0x138   :  { %v173_v25 = vrot.slane %v172_v24, 4 }
 0x13a   :  { %v174_v26 = vadd.f32 %v173_v25, %v172_v24 }
 0x13c   :  { %v175_v27 = vrot.slane %v174_v26, 2 }
 0x13e   :  { %v176_v28 = vadd.f32 %v175_v27, %v174_v26 }
 0x140   :  { %v177_v29 = vrot.slane %v176_v28, 1 }
 0x142   :  { %v178_v30 = vadd.f32 %v177_v29, %v176_v28 }
 0x144   :  { %210 = vpush %v178_v30 }
 0x175   :  { %s211_s2 = spop %210 }
 0x176   :  { %s180_s4 = ssub.f32 0.0, %s211_s2 }
 0x178   :  { %v181_v31 = vstv %s180_s4 }
 0x179   :  { %182 = vst [vmem:[#allocation6] sm:$0xff] %v181_v31 }
 0x17a   :  { %259 = shalt.err (!%p256_p12)
}
 0x17b   :  { %s260_s8 = scalar_lea.hbm %s335_s3, 128 }
 0x17c   :  { %p261_p13 = scmp.ne.s32.totalorder %s335_s3, %s260_s8  ;;  %p264_p0 = scmp.lt.u32.totalorder %s260_s8, %s335_s3 }
 0x17e   :  { %p266_p1 = pnand %p264_p0, %p261_p13 }
 0x180   :  { %269 = shalt.err (!%p266_p1)
}
 0x181   :  { %192 = dma.vmem_to_hbm [thread:$0]  %s190_s1, 128, %s335_s3, [#allocation5]  }
 0x182   :  { %272 = dma.done.wait [#allocation5], 128  }
 0x183   :  { %273 = vsyncadd [#allocation5], 4294967168 }
 0x184   :  { %196 = vsyncpa [#allocation4], 1 }
 0x185   :  { %197 = vsyncpa [#allocation5], 1 }

</bundles_post_ra>
